<compile_context>
chip_gen: v7x
topology: tpu7x:2x2x1
jax: 0.10.0
libtpu: 0.0.40
codegen_flags: <defaults>
</compile_context>

<pallas_src>
import functools

import jax
import jax.numpy as jnp
from jax.experimental import pallas as pl
from jax.experimental.pallas import tpu as pltpu

EPS = 1e-5          # PyTorch BatchNorm default eps
C_IN = 53
C_MID = 64
C_OUT = 4
P = 36              # H*W, fixed by l3 = Linear(36*4, 64)
HID = 64


# ------------------------------ fused kernel ------------------------------ #

def _fused_kernel(x_ref, pa_ref, pb_ref, o_ref, *, batch):
    """Whole network in one invocation; every intermediate stays in VMEM.

    x_ref : (53, B*36)   channels on sublanes, (batch, position) on lanes
    pa_ref: (64, 59)     columns: [ w1 (53) | b1 | g1 | be1 | b2 | g2 | be2 ]
                         (b2/g2/be2 occupy rows 0..3 of their columns)
    pb_ref: (5, 36, 64)  [0:4] = w3r with w3r[c,p,:] = l3.weight[:, c*36+p]
                         [4]   = rows: w2 (4), w4 (1), b3, g3, be3, b4@[8,0]
    o_ref : (1, B)       lane-dense output (batch on the lane axis)
    """
    B = batch
    inv_n = 1.0 / (B * P)

    x = x_ref[...]                     # (53, B*P)
    pa = pa_ref[...]                   # (64, 59)
    pb = pb_ref[...]                   # (5, 36, 64)

    # ---- static parameter slices (no extra DMAs)
    w1 = pa[:, 0:53]                   # (64, 53)
    b1, g1, be1 = pa[:, 53:54], pa[:, 54:55], pa[:, 55:56]        # (64,1)
    b2, g2, be2 = pa[0:4, 56:57], pa[0:4, 57:58], pa[0:4, 58:59]  # (4,1)
    misc = pb[4]                       # (36, 64)
    w2 = misc[0:4]                     # (4, 64)
    w4 = misc[4:5]                     # (1, 64)
    b3, g3, be3 = misc[5:6], misc[6:7], misc[7:8]                 # (1,64)
    b4 = misc[8:9, 0:1]                # (1, 1)

    # ---- conv1 (1x1) as a single 2-D MXU matmul: (64,53)@(53,B*P)
    h = jnp.dot(w1, x, preferred_element_type=jnp.float32) + b1   # (64, B*P)

    # ---- BatchNorm2d(64): training-mode stats, single-pass E[x^2]-mu^2
    mu = jnp.sum(h, axis=1, keepdims=True) * inv_n                # (64,1)
    ex2 = jnp.sum(h * h, axis=1, keepdims=True) * inv_n
    sc = g1 * jax.lax.rsqrt(ex2 - mu * mu + EPS)
    h = jnp.maximum(h * sc + (be1 - mu * sc), 0.0)                # BN + ReLU

    # ---- conv2 (1x1): (4,64)@(64,B*P)
    h2 = jnp.dot(w2, h, preferred_element_type=jnp.float32) + b2  # (4, B*P)

    # ---- BatchNorm2d(4)
    mu2 = jnp.sum(h2, axis=1, keepdims=True) * inv_n              # (4,1)
    ex22 = jnp.sum(h2 * h2, axis=1, keepdims=True) * inv_n
    sc2 = g2 * jax.lax.rsqrt(ex22 - mu2 * mu2 + EPS)
    h2 = jnp.maximum(h2 * sc2 + (be2 - mu2 * sc2), 0.0)           # (4, B*P)

    # ---- torch.flatten (f = c*P + p) + Linear(144 -> 64), no relayout:
    #      z[b] = b3 + sum_c  h2[c, b*P:(b+1)*P] @ w3r[c]
    rows = []
    for b in range(B):                 # static unroll (B is tiny)
        zb = b3                        # (1, 64)
        for c in range(C_OUT):         # static unroll (4)
            zb = zb + jnp.dot(h2[c:c + 1, b * P:(b + 1) * P], pb[c],
                              preferred_element_type=jnp.float32)
        rows.append(zb)
    z = jnp.concatenate(rows, axis=0)  # (B, 64)

    # ---- BatchNorm1d(64): stats over the batch axis, single pass
    inv_b = 1.0 / B
    mu3 = jnp.sum(z, axis=0, keepdims=True) * inv_b               # (1,64)
    ex23 = jnp.sum(z * z, axis=0, keepdims=True) * inv_b
    sc3 = g3 * jax.lax.rsqrt(ex23 - mu3 * mu3 + EPS)
    z = jnp.maximum(z * sc3 + (be3 - mu3 * sc3), 0.0)             # (B, 64)

    # ---- Linear(64 -> 1), emitted lane-dense as (1, B)
    o_ref[...] = jnp.einsum('ok,bk->ob', w4, z,
                            preferred_element_type=jnp.float32) + b4


# ------------------------------ wrapper ------------------------------------ #

def modele_forward(x_nchw, packed):
    """x_nchw: (B, 53, 6, 6) float32 -> (B, 1) float32."""
    B, C, H, W = x_nchw.shape
    assert C == C_IN and H * W == P
    # (B, 53, 6, 6) -> (53, B*36): tiny wrapper-side transpose folding the
    # batch into the lane axis so both convs become plain 2-D matmuls.
    x2 = x_nchw.reshape(B, C, P).transpose(1, 0, 2).reshape(C, B * P)

    vmem = pl.BlockSpec(memory_space=pltpu.MemorySpace.VMEM)
    out = pl.pallas_call(
        functools.partial(_fused_kernel, batch=B),
        out_shape=jax.ShapeDtypeStruct((1, B), jnp.float32),
        in_specs=[vmem, vmem, vmem],
        out_specs=vmem,
    )(x2, packed["pa"], packed["pb"])
    return out.reshape(B, 1)           # (1,B) -> (B,1): free reinterpretation


# ----------------------- deterministic parameters -------------------------- #

def init_raw_params(key):
    """PyTorch-layout parameters (deterministic)."""
    ks = jax.random.split(key, 8)

    def uni(k, shape, fan_in):
        bound = 1.0 / jnp.sqrt(jnp.float32(fan_in))
        return jax.random.uniform(k, shape, jnp.float32, -bound, bound)

    return {
        "w1": uni(ks[0], (64, 53), 53),   "b1": uni(ks[1], (64,), 53),
        "w2": uni(ks[2], (4, 64), 64),    "b2": uni(ks[3], (4,), 64),
        "w3": uni(ks[4], (64, 144), 144), "b3": uni(ks[5], (64,), 144),
        "w4": uni(ks[6], (1, 64), 64),    "b4": uni(ks[7], (1,), 64),
        "g1": jnp.ones((64,), jnp.float32), "be1": jnp.zeros((64,), jnp.float32),
        "g2": jnp.ones((4,), jnp.float32),  "be2": jnp.zeros((4,), jnp.float32),
        "g3": jnp.ones((64,), jnp.float32), "be3": jnp.zeros((64,), jnp.float32),
    }


def pack_params(r):
    """One-time repack into two kernel-friendly slabs (off the hot path)."""
    pa = jnp.zeros((64, 59), jnp.float32)
    pa = pa.at[:, 0:53].set(r["w1"])
    pa = pa.at[:, 53].set(r["b1"])
    pa = pa.at[:, 54].set(r["g1"])
    pa = pa.at[:, 55].set(r["be1"])
    pa = pa.at[0:4, 56].set(r["b2"])
    pa = pa.at[0:4, 57].set(r["g2"])
    pa = pa.at[0:4, 58].set(r["be2"])

    # w3r[c, p, o] = w3[o, c*36 + p]  reproduces torch.flatten's ordering.
    w3r = jnp.transpose(r["w3"].reshape(64, 4, 36), (1, 2, 0))    # (4, 36, 64)
    pb = jnp.zeros((5, 36, 64), jnp.float32)
    pb = pb.at[0:4].set(w3r)
    pb = pb.at[4, 0:4, :].set(r["w2"])
    pb = pb.at[4, 4, :].set(r["w4"][0])
    pb = pb.at[4, 5, :].set(r["b3"])
    pb = pb.at[4, 6, :].set(r["g3"])
    pb = pb.at[4, 7, :].set(r["be3"])
    pb = pb.at[4, 8, 0].set(r["b4"][0])
    return {"pa": pa, "pb": pb}


# ------------------------- pure-JAX reference ------------------------------ #

def modele_reference(x, r):
    """Mirrors the PyTorch forward (training-mode BatchNorm)."""
    hi = jax.lax.Precision.HIGHEST
    B = x.shape[0]
    xr = x.reshape(B, C_IN, P)

    def bn(v, g, b, axes):
        mu = jnp.mean(v, axis=axes, keepdims=True)
        var = jnp.mean((v - mu) ** 2, axis=axes, keepdims=True)
        return g * (v - mu) / jnp.sqrt(var + EPS) + b

    h = jnp.einsum('oc,bcp->bop', r["w1"], xr, precision=hi) + r["b1"][None, :, None]
    h = jnp.maximum(bn(h, r["g1"][None, :, None], r["be1"][None, :, None], (0, 2)), 0.0)
    h = jnp.einsum('qo,bop->bqp', r["w2"], h, precision=hi) + r["b2"][None, :, None]
    h = jnp.maximum(bn(h, r["g2"][None, :, None], r["be2"][None, :, None], (0, 2)), 0.0)
    f = h.reshape(B, C_OUT * P)                      # torch.flatten(start_dim=1)
    z = jnp.einsum('bf,of->bo', f, r["w3"], precision=hi) + r["b3"]
    z = jnp.maximum(bn(z, r["g3"], r["be3"], (0,)), 0.0)
    return jnp.einsum('bk,ok->bo', z, r["w4"], precision=hi) + r["b4"]


# --------------------------------- main ------------------------------------ #

if __name__ == "__main__":
    key = jax.random.PRNGKey(0)
    kx, kp = jax.random.split(key)

    B, C, H, W = 2, 53, 6, 6            # H*W = 36 as required by l3 (36*4)
    x = jax.random.normal(kx, (B, C, H, W), jnp.float32)
    raw = init_raw_params(kp)
    packed = pack_params(raw)

    out = jax.jit(modele_forward)(x, packed)
    out = jax.block_until_ready(out)
    assert out.shape == (B, 1) and out.dtype == jnp.float32

    # Loose sanity check against the pure-JAX reference (tolerant to MXU
    # precision differences; catches layout / flatten-ordering bugs).
    ref = modele_reference(x, raw)
    err = float(jnp.max(jnp.abs(out - ref)))
    assert err < 5e-2, f"max abs error {err}"

    print("KERNEL_OK")
</pallas_src>

<mosaic_0001>
module attributes {stable_mosaic.version = 11 : i64} {
  func.func @_fused_kernel(%arg0: memref<53x72xf32, #tpu.memory_space<vmem>>, %arg1: memref<64x59xf32, #tpu.memory_space<vmem>>, %arg2: memref<5x36x64xf32, #tpu.memory_space<vmem>>, %arg3: memref<1x2xf32, #tpu.memory_space<vmem>>) attributes {dimension_semantics = [], scalar_prefetch = 0 : i64, scratch_operands = 0 : i64, tpu.core_type = #tpu.core_type<tc>} {
    %c0 = arith.constant 0 : index
    %c0_0 = arith.constant 0 : index
    %0 = vector.load %arg0[%c0, %c0_0] : memref<53x72xf32, #tpu.memory_space<vmem>>, vector<53x72xf32>
    %c0_1 = arith.constant 0 : index
    %c0_2 = arith.constant 0 : index
    %1 = vector.load %arg1[%c0_1, %c0_2] : memref<64x59xf32, #tpu.memory_space<vmem>>, vector<64x59xf32>
    %c0_3 = arith.constant 0 : index
    %c0_4 = arith.constant 0 : index
    %c0_5 = arith.constant 0 : index
    %2 = vector.load %arg2[%c0_3, %c0_4, %c0_5] : memref<5x36x64xf32, #tpu.memory_space<vmem>>, vector<5x36x64xf32>
    %3 = vector.extract_strided_slice %1 {offsets = [0, 0], sizes = [64, 53], strides = [1, 1]} : vector<64x59xf32> to vector<64x53xf32>
    %4 = vector.extract_strided_slice %1 {offsets = [0, 53], sizes = [64, 1], strides = [1, 1]} : vector<64x59xf32> to vector<64x1xf32>
    %5 = vector.extract_strided_slice %1 {offsets = [0, 54], sizes = [64, 1], strides = [1, 1]} : vector<64x59xf32> to vector<64x1xf32>
    %6 = vector.extract_strided_slice %1 {offsets = [0, 55], sizes = [64, 1], strides = [1, 1]} : vector<64x59xf32> to vector<64x1xf32>
    %7 = vector.extract_strided_slice %1 {offsets = [0, 56], sizes = [4, 1], strides = [1, 1]} : vector<64x59xf32> to vector<4x1xf32>
    %8 = vector.extract_strided_slice %1 {offsets = [0, 57], sizes = [4, 1], strides = [1, 1]} : vector<64x59xf32> to vector<4x1xf32>
    %9 = vector.extract_strided_slice %1 {offsets = [0, 58], sizes = [4, 1], strides = [1, 1]} : vector<64x59xf32> to vector<4x1xf32>
    %10 = vector.extract_strided_slice %2 {offsets = [4, 0, 0], sizes = [1, 36, 64], strides = [1, 1, 1]} : vector<5x36x64xf32> to vector<1x36x64xf32>
    %11 = vector.shape_cast %10 : vector<1x36x64xf32> to vector<36x64xf32>
    %12 = vector.extract_strided_slice %11 {offsets = [0, 0], sizes = [4, 64], strides = [1, 1]} : vector<36x64xf32> to vector<4x64xf32>
    %13 = vector.extract_strided_slice %11 {offsets = [4, 0], sizes = [1, 64], strides = [1, 1]} : vector<36x64xf32> to vector<1x64xf32>
    %14 = vector.extract_strided_slice %11 {offsets = [5, 0], sizes = [1, 64], strides = [1, 1]} : vector<36x64xf32> to vector<1x64xf32>
    %15 = vector.extract_strided_slice %11 {offsets = [6, 0], sizes = [1, 64], strides = [1, 1]} : vector<36x64xf32> to vector<1x64xf32>
    %16 = vector.extract_strided_slice %11 {offsets = [7, 0], sizes = [1, 64], strides = [1, 1]} : vector<36x64xf32> to vector<1x64xf32>
    %17 = vector.extract_strided_slice %11 {offsets = [8, 0], sizes = [1, 1], strides = [1, 1]} : vector<36x64xf32> to vector<1x1xf32>
    %cst = arith.constant dense<0.000000e+00> : vector<64x72xf32>
    %18 = tpu.matmul %3, %0, %cst {dimension_numbers = #tpu.dot_dimension_numbers<[1], [0], [0], [1], [0, 0, 1, 1], [], []>} : vector<64x53xf32>, vector<53x72xf32>, vector<64x72xf32> -> vector<64x72xf32>
    %19 = vector.broadcast %4 : vector<64x1xf32> to vector<64x72xf32>
    %20 = arith.addf %18, %19 : vector<64x72xf32>
    %cst_6 = arith.constant dense<0.000000e+00> : vector<64xf32>
    %21 = vector.multi_reduction <add>, %20, %cst_6 [1] : vector<64x72xf32> to vector<64xf32>
    %22 = vector.shape_cast %21 : vector<64xf32> to vector<64x1xf32>
    %cst_7 = arith.constant 0.013888889 : f32
    %23 = vector.broadcast %cst_7 : f32 to vector<64x1xf32>
    %24 = arith.mulf %22, %23 : vector<64x1xf32>
    %25 = arith.mulf %20, %20 : vector<64x72xf32>
    %cst_8 = arith.constant dense<0.000000e+00> : vector<64xf32>
    %26 = vector.multi_reduction <add>, %25, %cst_8 [1] : vector<64x72xf32> to vector<64xf32>
    %27 = vector.shape_cast %26 : vector<64xf32> to vector<64x1xf32>
    %cst_9 = arith.constant 0.013888889 : f32
    %28 = vector.broadcast %cst_9 : f32 to vector<64x1xf32>
    %29 = arith.mulf %27, %28 : vector<64x1xf32>
    %30 = arith.mulf %24, %24 : vector<64x1xf32>
    %31 = arith.subf %29, %30 : vector<64x1xf32>
    %cst_10 = arith.constant 9.99999974E-6 : f32
    %32 = vector.broadcast %cst_10 : f32 to vector<64x1xf32>
    %33 = arith.addf %31, %32 : vector<64x1xf32>
    %34 = math.rsqrt %33 : vector<64x1xf32>
    %35 = arith.mulf %5, %34 : vector<64x1xf32>
    %36 = vector.broadcast %35 : vector<64x1xf32> to vector<64x72xf32>
    %37 = arith.mulf %20, %36 : vector<64x72xf32>
    %38 = arith.mulf %24, %35 : vector<64x1xf32>
    %39 = arith.subf %6, %38 : vector<64x1xf32>
    %40 = vector.broadcast %39 : vector<64x1xf32> to vector<64x72xf32>
    %41 = arith.addf %37, %40 : vector<64x72xf32>
    %cst_11 = arith.constant 0.000000e+00 : f32
    %42 = vector.broadcast %cst_11 : f32 to vector<64x72xf32>
    %43 = arith.maximumf %41, %42 : vector<64x72xf32>
    %cst_12 = arith.constant dense<0.000000e+00> : vector<4x72xf32>
    %44 = tpu.matmul %12, %43, %cst_12 {dimension_numbers = #tpu.dot_dimension_numbers<[1], [0], [0], [1], [0, 0, 1, 1], [], []>} : vector<4x64xf32>, vector<64x72xf32>, vector<4x72xf32> -> vector<4x72xf32>
    %45 = vector.broadcast %7 : vector<4x1xf32> to vector<4x72xf32>
    %46 = arith.addf %44, %45 : vector<4x72xf32>
    %cst_13 = arith.constant dense<0.000000e+00> : vector<4xf32>
    %47 = vector.multi_reduction <add>, %46, %cst_13 [1] : vector<4x72xf32> to vector<4xf32>
    %48 = vector.shape_cast %47 : vector<4xf32> to vector<4x1xf32>
    %cst_14 = arith.constant 0.013888889 : f32
    %49 = vector.broadcast %cst_14 : f32 to vector<4x1xf32>
    %50 = arith.mulf %48, %49 : vector<4x1xf32>
    %51 = arith.mulf %46, %46 : vector<4x72xf32>
    %cst_15 = arith.constant dense<0.000000e+00> : vector<4xf32>
    %52 = vector.multi_reduction <add>, %51, %cst_15 [1] : vector<4x72xf32> to vector<4xf32>
    %53 = vector.shape_cast %52 : vector<4xf32> to vector<4x1xf32>
    %cst_16 = arith.constant 0.013888889 : f32
    %54 = vector.broadcast %cst_16 : f32 to vector<4x1xf32>
    %55 = arith.mulf %53, %54 : vector<4x1xf32>
    %56 = arith.mulf %50, %50 : vector<4x1xf32>
    %57 = arith.subf %55, %56 : vector<4x1xf32>
    %cst_17 = arith.constant 9.99999974E-6 : f32
    %58 = vector.broadcast %cst_17 : f32 to vector<4x1xf32>
    %59 = arith.addf %57, %58 : vector<4x1xf32>
    %60 = math.rsqrt %59 : vector<4x1xf32>
    %61 = arith.mulf %8, %60 : vector<4x1xf32>
    %62 = vector.broadcast %61 : vector<4x1xf32> to vector<4x72xf32>
    %63 = arith.mulf %46, %62 : vector<4x72xf32>
    %64 = arith.mulf %50, %61 : vector<4x1xf32>
    %65 = arith.subf %9, %64 : vector<4x1xf32>
    %66 = vector.broadcast %65 : vector<4x1xf32> to vector<4x72xf32>
    %67 = arith.addf %63, %66 : vector<4x72xf32>
    %cst_18 = arith.constant 0.000000e+00 : f32
    %68 = vector.broadcast %cst_18 : f32 to vector<4x72xf32>
    %69 = arith.maximumf %67, %68 : vector<4x72xf32>
    %70 = vector.extract_strided_slice %69 {offsets = [0, 0], sizes = [1, 36], strides = [1, 1]} : vector<4x72xf32> to vector<1x36xf32>
    %71 = vector.extract_strided_slice %2 {offsets = [0, 0, 0], sizes = [1, 36, 64], strides = [1, 1, 1]} : vector<5x36x64xf32> to vector<1x36x64xf32>
    %72 = vector.shape_cast %71 : vector<1x36x64xf32> to vector<36x64xf32>
    %cst_19 = arith.constant dense<0.000000e+00> : vector<1x64xf32>
    %73 = tpu.matmul %70, %72, %cst_19 {dimension_numbers = #tpu.dot_dimension_numbers<[1], [0], [0], [1], [0, 0, 1, 1], [], []>} : vector<1x36xf32>, vector<36x64xf32>, vector<1x64xf32> -> vector<1x64xf32>
    %74 = arith.addf %14, %73 : vector<1x64xf32>
    %75 = vector.extract_strided_slice %69 {offsets = [1, 0], sizes = [1, 36], strides = [1, 1]} : vector<4x72xf32> to vector<1x36xf32>
    %76 = vector.extract_strided_slice %2 {offsets = [1, 0, 0], sizes = [1, 36, 64], strides = [1, 1, 1]} : vector<5x36x64xf32> to vector<1x36x64xf32>
    %77 = vector.shape_cast %76 : vector<1x36x64xf32> to vector<36x64xf32>
    %cst_20 = arith.constant dense<0.000000e+00> : vector<1x64xf32>
    %78 = tpu.matmul %75, %77, %cst_20 {dimension_numbers = #tpu.dot_dimension_numbers<[1], [0], [0], [1], [0, 0, 1, 1], [], []>} : vector<1x36xf32>, vector<36x64xf32>, vector<1x64xf32> -> vector<1x64xf32>
    %79 = arith.addf %74, %78 : vector<1x64xf32>
    %80 = vector.extract_strided_slice %69 {offsets = [2, 0], sizes = [1, 36], strides = [1, 1]} : vector<4x72xf32> to vector<1x36xf32>
    %81 = vector.extract_strided_slice %2 {offsets = [2, 0, 0], sizes = [1, 36, 64], strides = [1, 1, 1]} : vector<5x36x64xf32> to vector<1x36x64xf32>
    %82 = vector.shape_cast %81 : vector<1x36x64xf32> to vector<36x64xf32>
    %cst_21 = arith.constant dense<0.000000e+00> : vector<1x64xf32>
    %83 = tpu.matmul %80, %82, %cst_21 {dimension_numbers = #tpu.dot_dimension_numbers<[1], [0], [0], [1], [0, 0, 1, 1], [], []>} : vector<1x36xf32>, vector<36x64xf32>, vector<1x64xf32> -> vector<1x64xf32>
    %84 = arith.addf %79, %83 : vector<1x64xf32>
    %85 = vector.extract_strided_slice %69 {offsets = [3, 0], sizes = [1, 36], strides = [1, 1]} : vector<4x72xf32> to vector<1x36xf32>
    %86 = vector.extract_strided_slice %2 {offsets = [3, 0, 0], sizes = [1, 36, 64], strides = [1, 1, 1]} : vector<5x36x64xf32> to vector<1x36x64xf32>
    %87 = vector.shape_cast %86 : vector<1x36x64xf32> to vector<36x64xf32>
    %cst_22 = arith.constant dense<0.000000e+00> : vector<1x64xf32>
    %88 = tpu.matmul %85, %87, %cst_22 {dimension_numbers = #tpu.dot_dimension_numbers<[1], [0], [0], [1], [0, 0, 1, 1], [], []>} : vector<1x36xf32>, vector<36x64xf32>, vector<1x64xf32> -> vector<1x64xf32>
    %89 = arith.addf %84, %88 : vector<1x64xf32>
    %90 = vector.extract_strided_slice %69 {offsets = [0, 36], sizes = [1, 36], strides = [1, 1]} : vector<4x72xf32> to vector<1x36xf32>
    %91 = vector.extract_strided_slice %2 {offsets = [0, 0, 0], sizes = [1, 36, 64], strides = [1, 1, 1]} : vector<5x36x64xf32> to vector<1x36x64xf32>
    %92 = vector.shape_cast %91 : vector<1x36x64xf32> to vector<36x64xf32>
    %cst_23 = arith.constant dense<0.000000e+00> : vector<1x64xf32>
    %93 = tpu.matmul %90, %92, %cst_23 {dimension_numbers = #tpu.dot_dimension_numbers<[1], [0], [0], [1], [0, 0, 1, 1], [], []>} : vector<1x36xf32>, vector<36x64xf32>, vector<1x64xf32> -> vector<1x64xf32>
    %94 = arith.addf %14, %93 : vector<1x64xf32>
    %95 = vector.extract_strided_slice %69 {offsets = [1, 36], sizes = [1, 36], strides = [1, 1]} : vector<4x72xf32> to vector<1x36xf32>
    %96 = vector.extract_strided_slice %2 {offsets = [1, 0, 0], sizes = [1, 36, 64], strides = [1, 1, 1]} : vector<5x36x64xf32> to vector<1x36x64xf32>
    %97 = vector.shape_cast %96 : vector<1x36x64xf32> to vector<36x64xf32>
    %cst_24 = arith.constant dense<0.000000e+00> : vector<1x64xf32>
    %98 = tpu.matmul %95, %97, %cst_24 {dimension_numbers = #tpu.dot_dimension_numbers<[1], [0], [0], [1], [0, 0, 1, 1], [], []>} : vector<1x36xf32>, vector<36x64xf32>, vector<1x64xf32> -> vector<1x64xf32>
    %99 = arith.addf %94, %98 : vector<1x64xf32>
    %100 = vector.extract_strided_slice %69 {offsets = [2, 36], sizes = [1, 36], strides = [1, 1]} : vector<4x72xf32> to vector<1x36xf32>
    %101 = vector.extract_strided_slice %2 {offsets = [2, 0, 0], sizes = [1, 36, 64], strides = [1, 1, 1]} : vector<5x36x64xf32> to vector<1x36x64xf32>
    %102 = vector.shape_cast %101 : vector<1x36x64xf32> to vector<36x64xf32>
    %cst_25 = arith.constant dense<0.000000e+00> : vector<1x64xf32>
    %103 = tpu.matmul %100, %102, %cst_25 {dimension_numbers = #tpu.dot_dimension_numbers<[1], [0], [0], [1], [0, 0, 1, 1], [], []>} : vector<1x36xf32>, vector<36x64xf32>, vector<1x64xf32> -> vector<1x64xf32>
    %104 = arith.addf %99, %103 : vector<1x64xf32>
    %105 = vector.extract_strided_slice %69 {offsets = [3, 36], sizes = [1, 36], strides = [1, 1]} : vector<4x72xf32> to vector<1x36xf32>
    %106 = vector.extract_strided_slice %2 {offsets = [3, 0, 0], sizes = [1, 36, 64], strides = [1, 1, 1]} : vector<5x36x64xf32> to vector<1x36x64xf32>
    %107 = vector.shape_cast %106 : vector<1x36x64xf32> to vector<36x64xf32>
    %cst_26 = arith.constant dense<0.000000e+00> : vector<1x64xf32>
    %108 = tpu.matmul %105, %107, %cst_26 {dimension_numbers = #tpu.dot_dimension_numbers<[1], [0], [0], [1], [0, 0, 1, 1], [], []>} : vector<1x36xf32>, vector<36x64xf32>, vector<1x64xf32> -> vector<1x64xf32>
    %109 = arith.addf %104, %108 : vector<1x64xf32>
    %110 = tpu.concatenate %89, %109 in 0 : vector<1x64xf32>, vector<1x64xf32> -> vector<2x64xf32>
    %cst_27 = arith.constant dense<0.000000e+00> : vector<64xf32>
    %111 = vector.multi_reduction <add>, %110, %cst_27 [0] : vector<2x64xf32> to vector<64xf32>
    %112 = vector.shape_cast %111 : vector<64xf32> to vector<1x64xf32>
    %cst_28 = arith.constant 5.000000e-01 : f32
    %113 = vector.broadcast %cst_28 : f32 to vector<1x64xf32>
    %114 = arith.mulf %112, %113 : vector<1x64xf32>
    %115 = arith.mulf %110, %110 : vector<2x64xf32>
    %cst_29 = arith.constant dense<0.000000e+00> : vector<64xf32>
    %116 = vector.multi_reduction <add>, %115, %cst_29 [0] : vector<2x64xf32> to vector<64xf32>
    %117 = vector.shape_cast %116 : vector<64xf32> to vector<1x64xf32>
    %cst_30 = arith.constant 5.000000e-01 : f32
    %118 = vector.broadcast %cst_30 : f32 to vector<1x64xf32>
    %119 = arith.mulf %117, %118 : vector<1x64xf32>
    %120 = arith.mulf %114, %114 : vector<1x64xf32>
    %121 = arith.subf %119, %120 : vector<1x64xf32>
    %cst_31 = arith.constant 9.99999974E-6 : f32
    %122 = vector.broadcast %cst_31 : f32 to vector<1x64xf32>
    %123 = arith.addf %121, %122 : vector<1x64xf32>
    %124 = math.rsqrt %123 : vector<1x64xf32>
    %125 = arith.mulf %15, %124 : vector<1x64xf32>
    %126 = vector.broadcast %125 : vector<1x64xf32> to vector<2x64xf32>
    %127 = arith.mulf %110, %126 : vector<2x64xf32>
    %128 = arith.mulf %114, %125 : vector<1x64xf32>
    %129 = arith.subf %16, %128 : vector<1x64xf32>
    %130 = vector.broadcast %129 : vector<1x64xf32> to vector<2x64xf32>
    %131 = arith.addf %127, %130 : vector<2x64xf32>
    %cst_32 = arith.constant 0.000000e+00 : f32
    %132 = vector.broadcast %cst_32 : f32 to vector<2x64xf32>
    %133 = arith.maximumf %131, %132 : vector<2x64xf32>
    "tpu.trace_start"() <{level = 10 : i32, message = "ok,bk->ob"}> : () -> ()
    %cst_33 = arith.constant dense<0.000000e+00> : vector<1x2xf32>
    %134 = tpu.matmul %13, %133, %cst_33 {dimension_numbers = #tpu.dot_dimension_numbers<[1], [1], [0], [0], [0, 0, 1, 0], [], []>} : vector<1x64xf32>, vector<2x64xf32>, vector<1x2xf32> -> vector<1x2xf32>
    "tpu.trace_stop"() : () -> ()
    %135 = vector.broadcast %17 : vector<1x1xf32> to vector<1x2xf32>
    %136 = arith.addf %134, %135 : vector<1x2xf32>
    %c0_34 = arith.constant 0 : index
    %c0_35 = arith.constant 0 : index
    %137 = vector.load %arg3[%c0_34, %c0_35] : memref<1x2xf32, #tpu.memory_space<vmem>>, vector<1x2xf32>
    tpu.vector_store %arg3[%c0_34, %c0_35], %136 {strides = array<i32>} : memref<1x2xf32, #tpu.memory_space<vmem>>, vector<1x2xf32>,
    return
  }
}

</mosaic_0001>

<bundles_post_ra>
// kernel: modele_forward.1
= control target key start
LH: loop header
LB: loop body
LE: loop exit
PB: predicated region body
PF: predicated region fallthrough
CT: control target
= control target key end

     0   :  { %vm92_vm0 = vcmask 433152   ;;  %v1769_v5 = vmov 53   ;;  %s2158_s0 = inlined_call_operand.vmem [shape: f32[53,72], index: 0, kind: input, shape index: {}]   ;;  %s2159_s1 = inlined_call_operand.vmem [shape: f32[64,59], index: 1, kind: input, shape index: {}]   ;;  %s2160_s2 = inlined_call_operand.vmem [shape: f32[5,36,64], index: 2, kind: input, shape index: {}]   ;;  %s2161_s3 = inlined_call_operand.hbm [shape: f32[1,2], index: 3, kind: output, shape index: {}]  }
   0x1   :  { %v15_v0 = vld [vmem:[%s2158_s0] sm:$0xff]  ;;  %v16_v1 = vld [vmem:[%s2158_s0 + $0x8] sm:$0xff]  ;;  %v17_v2 = vld [vmem:[%s2158_s0 + $0x10] sm:$0xff]  ;;  %1714 = vset.pattern.permute.xlu0 %v1769_v5  ;;  %1715 = vset.pattern.permute.xlu1 %v1769_v5 }
   0x2   :  { %v1629_v3 = vpack.c.bf16 %v16_v1, %v15_v0  ;;  %v18_v4 = vld [vmem:[%s2158_s0 + $0x18] sm:$0xff]  ;;  %v19_v7 = vld [vmem:[%s2158_s0 + $0x20] sm:$0xff]  ;;  %v20_v8 = vld [vmem:[%s2158_s0 + $0x28] sm:$0xff] }
   0x3   :  { %v1633_v6 = vpack.c.bf16 %v18_v4, %v17_v2  ;;  %v1823_v9 = vld [vmem:[%s2159_s1] sm:$0xff]  ;;  %v1830_v10 = vld [vmem:[%s2159_s1 + $0x10] sm:$0xff]  ;;  %v1637_v11 = vpack.c.bf16 %v20_v8, %v19_v7 }
   0x4   :  { %1630 = vmatprep.subr.bf16.mxu0 %v1629_v3  ;;  %1489 = vmatprep.mubr.msk.f32.mxu0 %vm92_vm0, %v1823_v9 }
   0x5   :  { %1632 = vmatpush3.bf16.msra.mxu0 %v1629_v3  ;;  %54 = vperm.xlu0 %1714, %v1823_v9  }
   0x6   :  { %1634 = vmatprep.subr.bf16.mxu0 %v1633_v6  ;;  %64 = vperm.xlu1 %1715, %v1830_v10  }
   0x7   :  { %8 = vsyncpa [#allocation3], 0  ;;  %v1837_v12 = vld [vmem:[%s2159_s1 + $0x8] sm:$0xff]  ;;  %v1842_v13 = vld [vmem:[%s2159_s1 + $0x18] sm:$0xff]  ;;  %vm109_vm1 = vcmask 1044480   ;;  %vm218_vm2 = vcmask 588800  }
   0x8   :  { %v21_v14 = vld [vmem:[%s2158_s0 + $0x30] sm:$0x1f]  ;;  %v1852_v15 = vld [vmem:[%s2159_s1 + $0x20] sm:$0xff]  ;;  %v1857_v16 = vld [vmem:[%s2159_s1 + $0x28] sm:$0xff]  ;;  %v1770_v3 = vmov 54   ;;  %vm1774_vm3 = vmmov 0  }
   0x9   :  { %1636 = vmatpush3.bf16.msra.mxu0 %v1633_v6  ;;  %59 = vperm.xlu0 %1714, %v1837_v12   ;;  %v1864_v17 = vld [vmem:[%s2159_s1 + $0x30] sm:$0xff]  ;;  %v1869_v18 = vld [vmem:[%s2159_s1 + $0x38] sm:$0xff]  ;;  %s1771_s1 = smov 1   ;;  %vm487_vm4 = vcmask 523264   ;;  %vm561_vm5 = vcmask 584704   ;;  %vm599_vm6 = vcmask 1043456  }
   0xa   :  { %1638 = vmatprep.subr.bf16.mxu0 %v1637_v11  ;;  %69 = vperm.xlu1 %1715, %v1842_v13   ;;  %vm595_vm7 = vcmask 293888   ;;  %s1779_s19 = smov 92   ;;  %vm1235_vm8 = vcmask 1040384   ;;  %vm1237_vm9 = vcmask 517120   ;;  %vm1357_vm10 = vcmask 8192  }
   0xd   :  { %1640 = vmatpush3.bf16.msra.mxu0 %v1637_v11  ;;  %74 = vperm.xlu0 %1714, %v1852_v15  }
   0xe   :  { %1487 = vmatprep.subr.msk.mxu0 %vm109_vm1, %v21_v14  ;;  %79 = vperm.xlu1 %1715, %v1857_v16  }
  0x11   :  { %1488 = vmatpush3.msk.msra.mxu0 %vm109_vm1, %v21_v14  ;;  %84 = vperm.xlu0 %1714, %v1864_v17  }
  0x12   :  { %1490 = vmatmul.mubr.msk.f32.vlgmr.msra.gmra.mrb[0].mxu0 %vm92_vm0, %v1837_v12  ;;  %89 = vperm.xlu1 %1715, %v1869_v18  }
  0x13   :  { %1492 = vmatprep.mubr.msk.f32.mxu0 %vm92_vm0, %v1830_v10 }
  0x15   :  { %1716 = vset.pattern.permute.xlu0 %v1770_v3 }
  0x16   :  { %1493 = vmatmul.mubr.msk.f32.gmra.mrb[2].mxu0 %vm92_vm0, %v1842_v13  ;;  %1717 = vset.pattern.permute.xlu1 %v1770_v3 }
  0x17   :  { %1495 = vmatprep.mubr.msk.f32.mxu0 %vm92_vm0, %v1852_v15 }
  0x1a   :  { %1496 = vmatmul.mubr.msk.f32.gmra.mrb[4].mxu0 %vm92_vm0, %v1857_v16 }
  0x1b   :  { %1498 = vmatprep.mubr.msk.f32.mxu0 %vm92_vm0, %v1864_v17 }
  0x1e   :  { %1499 = vmatmul.mubr.msk.f32.gmra.mrb[6].mxu0 %vm92_vm0, %v1869_v18 }
  0x84   :  { %v55_v19 = vpop.permute.xlu0 %54 }
  0x85   :  { %v65_v29 = vpop.permute.xlu1 %64 }
  0x88   :  { %v60_v20 = vpop.permute.xlu0 %59 }
  0x89   :  { %v70_v40 = vpop.permute.xlu1 %69 }
  0x8c   :  { %v75_v39 = vpop.permute.xlu0 %74 }
  0x8d   :  { %v80_v51 = vpop.permute.xlu1 %79 }
  0x90   :  { %v85_v50 = vpop.permute.xlu0 %84 }
  0x91   :  { %v90_v60 = vpop.permute.xlu1 %89 }
  0xe5   :  { %v1491_v21 = vpop.f32.mrb[0].mxu0 }
  0xe6   :  { %v1887_v22 = vadd.f32 %v1491_v21, %v60_v20  ;;  %v179_v23 = vpop.f32.mrb[1].mxu0 }
  0xe7   :  { %v1889_v24 = vadd.f32 %v179_v23, %v55_v19 }
  0xe8   :  { %v222_v25 = vsel %vm218_vm2, %v1887_v22, 0.0  ;;  %v252_v28 = vmul.f32 %v1887_v22, %v1887_v22 }
  0xe9   :  { %223 = vadd.xlane.f32.xlu1 %v222_v25  ;;  %v1494_v26 = vpop.f32.mrb[2].mxu0  ;;  %v219_v27 = vsel %vm218_vm2, %v1889_v24, 0.0  ;;  %v251_v36 = vmul.f32 %v1889_v24, %v1889_v24 }
  0xea   :  { %v189_v30 = vpop.f32.mrb[3].mxu0  ;;  %220 = vadd.xlane.f32.xlu0 %v219_v27  ;;  %v262_v34 = vsel %vm218_vm2, %v252_v28, 0.0  ;;  %v1907_v41 = vadd.f32 %v1494_v26, %v70_v40 }
  0xeb   :  { %v1897_v31 = vadd.f32 %v189_v30, %v65_v29  ;;  %v259_v44 = vsel %vm218_vm2, %v251_v36, 0.0 }
  0xec   :  { %v228_v47 = vsel %vm218_vm2, %v1907_v41, 0.0  ;;  %v254_v49 = vmul.f32 %v1907_v41, %v1907_v41 }
  0xed   :  { %v1497_v32 = vpop.f32.mrb[4].mxu0  ;;  %v225_v33 = vsel %vm218_vm2, %v1897_v31, 0.0  ;;  %v253_v35 = vmul.f32 %v1897_v31, %v1897_v31 }
  0xee   :  { %v199_v37 = vpop.f32.mrb[5].mxu0  ;;  %226 = vadd.xlane.f32.xlu1 %v225_v33  ;;  %263 = vadd.xlane.f32.xlu0 %v262_v34  ;;  %v1920_v52 = vadd.f32 %v1497_v32, %v80_v51  ;;  %v268_v55 = vsel %vm218_vm2, %v254_v49, 0.0 }
  0xef   :  { %v265_v38 = vsel %vm218_vm2, %v253_v35, 0.0  ;;  %v1909_v42 = vadd.f32 %v199_v37, %v75_v39 }
  0xf0   :  { %v234_v57 = vsel %vm218_vm2, %v1920_v52, 0.0  ;;  %v256_v59 = vmul.f32 %v1920_v52, %v1920_v52 }
  0xf1   :  { %v1500_v43 = vpop.f32.mrb[6].mxu0  ;;  %v231_v46 = vsel %vm218_vm2, %v1909_v42, 0.0  ;;  %v255_v48 = vmul.f32 %v1909_v42, %v1909_v42 }
  0xf2   :  { %v209_v45 = vpop.f32.mrb[7].mxu0  ;;  %266 = vadd.xlane.f32.xlu1 %v265_v38  ;;  %260 = vadd.xlane.f32.xlu0 %v259_v44  ;;  %v1934_v61 = vadd.f32 %v1500_v43, %v90_v60  ;;  %v274_v63 = vsel %vm218_vm2, %v256_v59, 0.0 }
  0xf3   :  { %v1922_v53 = vadd.f32 %v209_v45, %v85_v50  ;;  %v271_v54 = vsel %vm218_vm2, %v255_v48, 0.0 }
  0xf4   :  { %v240_v0 = vsel %vm218_vm2, %v1934_v61, 0.0  ;;  %v258_v1 = vmul.f32 %v1934_v61, %v1934_v61 }
  0xf5   :  { %v237_v56 = vsel %vm218_vm2, %v1922_v53, 0.0  ;;  %v257_v58 = vmul.f32 %v1922_v53, %v1922_v53 }
  0xf6   :  { %232 = vadd.xlane.f32.xlu1 %v231_v46  ;;  %229 = vadd.xlane.f32.xlu0 %v228_v47  ;;  %v280_v2 = vsel %vm218_vm2, %v258_v1, 0.0 }
  0xf7   :  { %v277_v62 = vsel %vm218_vm2, %v257_v58, 0.0 }
  0xfa   :  { %272 = vadd.xlane.f32.xlu1 %v271_v54  ;;  %269 = vadd.xlane.f32.xlu0 %v268_v55 }
  0xfe   :  { %238 = vadd.xlane.f32.xlu1 %v237_v56  ;;  %235 = vadd.xlane.f32.xlu0 %v234_v57 }
 0x102   :  { %278 = vadd.xlane.f32.xlu1 %v277_v62  ;;  %275 = vadd.xlane.f32.xlu0 %v274_v63 }
 0x106   :  { %241 = vadd.xlane.f32.xlu0 %v240_v0 }
 0x10a   :  { %281 = vadd.xlane.f32.xlu0 %v280_v2 }
 0x176   :  { %v224_v4 = vpop.xlane.xlu1 %223 }
 0x177   :  { %v221_v5 = vpop.xlane.xlu0 %220  ;;  %v244_v6 = vmul.f32 0.013888889, %v224_v4 }
 0x178   :  { %v243_v14 = vmul.f32 0.013888889, %v221_v5 }
 0x179   :  { %v292_v11 = vmul.f32 %v244_v6, %v244_v6 }
 0x17a   :  { %v291_v26 = vmul.f32 %v243_v14, %v243_v14 }
 0x17b   :  { %v227_v7 = vpop.xlane.xlu1 %226  ;;  %v264_v8 = vpop.xlane.xlu0 %263 }
 0x17c   :  { %v284_v19 = vmul.f32 0.013888889, %v264_v8  ;;  %v1943_v20 = vmul.f32 0.013888889, %v227_v7 }
 0x17e   :  { %v300_v21 = vsub.f32 %v284_v19, %v292_v11  ;;  %v293_v29 = vmul.f32 %v1943_v20, %v1943_v20 }
 0x17f   :  { %v267_v23 = vpop.xlane.xlu1 %266  ;;  %v261_v25 = vpop.xlane.xlu0 %260 }
 0x180   :  { %v308_v27 = vadd.f32 1e-05, %v300_v21  ;;  %v283_v28 = vmul.f32 0.013888889, %v261_v25  ;;  %v285_v30 = vmul.f32 0.013888889, %v267_v23 }
 0x182   :  { %1725 = vrsqrt.f32 %v308_v27  ;;  %v299_v32 = vsub.f32 %v283_v28, %v291_v26  ;;  %v301_v37 = vsub.f32 %v285_v30, %v293_v29 }
 0x183   :  { %v233_v33 = vpop.xlane.xlu1 %232  ;;  %v230_v34 = vpop.xlane.xlu0 %229 }
 0x184   :  { %v307_v35 = vadd.f32 1e-05, %v299_v32  ;;  %v247_v36 = vmul.f32 0.013888889, %v233_v33  ;;  %v246_v38 = vmul.f32 0.013888889, %v230_v34 }
 0x185   :  { %v309_v47 = vadd.f32 1e-05, %v301_v37 }
 0x186   :  { %1727 = vrsqrt.f32 %v307_v35  ;;  %v295_v43 = vmul.f32 %v247_v36, %v247_v36  ;;  %v294_v44 = vmul.f32 %v246_v38, %v246_v38 }
 0x187   :  { %v273_v39 = vpop.xlane.xlu1 %272  ;;  %v270_v40 = vpop.xlane.xlu0 %269  ;;  %1729 = vrsqrt.f32 %v309_v47 }
 0x188   :  { %v287_v45 = vmul.f32 0.013888889, %v273_v39  ;;  %v286_v46 = vmul.f32 0.013888889, %v270_v40 }
 0x18a   :  { %v303_v48 = vsub.f32 %v287_v45, %v295_v43  ;;  %v302_v49 = vsub.f32 %v286_v46, %v294_v44 }
 0x18b   :  { %v239_v50 = vpop.xlane.xlu1 %238  ;;  %v236_v51 = vpop.xlane.xlu0 %235 }
 0x18c   :  { %v1726_v54 = vpop.eup %1725  ;;  %v311_v55 = vadd.f32 1e-05, %v303_v48  ;;  %v310_v56 = vadd.f32 1e-05, %v302_v49  ;;  %v249_v57 = vmul.f32 0.013888889, %v239_v50 }
 0x18d   :  { %v248_v58 = vmul.f32 0.013888889, %v236_v51  ;;  %v324_v59 = vmul.f32 %v1726_v54, %v1837_v12 }
 0x18e   :  { %1731 = vrsqrt.f32 %v311_v55  ;;  %v297_v0 = vmul.f32 %v249_v57, %v249_v57 }
 0x18f   :  { %1733 = vrsqrt.f32 %v310_v56  ;;  %v279_v60 = vpop.xlane.xlu1 %278  ;;  %v276_v62 = vpop.xlane.xlu0 %275  ;;  %v380_v63 = vmul.f32 %v324_v59, %v244_v6  ;;  %v296_v1 = vmul.f32 %v248_v58, %v248_v58  ;;  %v1773_v56 = vmov 0.0|0.0  }
 0x190   :  { %v289_v2 = vmul.f32 0.013888889, %v279_v60  ;;  %v288_v3 = vmul.f32 0.013888889, %v276_v62  ;;  %v1728_v4 = vpop.eup %1727  ;;  %1641 = vmatprep.subr.bf16.mxu1 %v1773_v56  ;;  %1659 = vmatprep.subr.bf16.mxu0 %v1773_v56 }
 0x191   :  { %397 = vrot.lane.b32.xlu0 %v380_v63, %s1771_s1  ;;  %v323_v8 = vmul.f32 %v1728_v4, %v1823_v9  ;;  %v1730_v6 = vpop.eup %1729  ;;  %v1775_v4 = vmov 0.0  }
 0x192   :  { %v305_v5 = vsub.f32 %v289_v2, %v297_v0  ;;  %v304_v7 = vsub.f32 %v288_v3, %v296_v1  ;;  %1517 = vmatprep.mubr.msk.f32.mxu1 %vm1774_vm3, %v1775_v4  ;;  %1543 = vmatprep.mubr.msk.f32.mxu0 %vm1774_vm3, %v1775_v4 }
 0x193   :  { %v242_v11 = vpop.xlane.xlu0 %241  ;;  %v379_v25 = vmul.f32 %v323_v8, %v243_v14  ;;  %v325_v14 = vmul.f32 %v1730_v6, %v1830_v10 }
 0x194   :  { %v313_v19 = vadd.f32 1e-05, %v305_v5  ;;  %v312_v21 = vadd.f32 1e-05, %v304_v7  ;;  %v250_v23 = vmul.f32 0.013888889, %v242_v11 }
 0x195   :  { %395 = vrot.lane.b32.xlu1 %v379_v25, %s1771_s1  ;;  %v381_v43 = vmul.f32 %v325_v14, %v1943_v20  ;;  %v1772_v20 = vmov 55  }
 0x196   :  { %1735 = vrsqrt.f32 %v313_v19  ;;  %v298_v28 = vmul.f32 %v250_v23, %v250_v23 }
 0x197   :  { %1737 = vrsqrt.f32 %v312_v21  ;;  %v282_v26 = vpop.xlane.xlu0 %281 }
 0x198   :  { %v1732_v27 = vpop.eup %1731  ;;  %v290_v29 = vmul.f32 0.013888889, %v282_v26 }
 0x199   :  { %v1734_v30 = vpop.eup %1733  ;;  %v327_v32 = vmul.f32 %v1732_v27, %v1852_v15 }
 0x19a   :  { %v306_v33 = vsub.f32 %v290_v29, %v298_v28  ;;  %v326_v34 = vmul.f32 %v1734_v30, %v1842_v13 }
 0x19b   :  { %v383_v35 = vmul.f32 %v327_v32, %v247_v36 }
 0x19c   :  { %v314_v37 = vadd.f32 1e-05, %v306_v33  ;;  %v382_v39 = vmul.f32 %v326_v34, %v246_v38 }
 0x19d   :  { %403 = vrot.lane.b32.xlu0 %v383_v35, %s1771_s1 }
 0x19e   :  { %1739 = vrsqrt.f32 %v314_v37  ;;  %401 = vrot.lane.b32.xlu1 %v382_v39, %s1771_s1 }
 0x1a0   :  { %v1736_v40 = vpop.eup %1735 }
 0x1a1   :  { %v1738_v44 = vpop.eup %1737  ;;  %v329_v45 = vmul.f32 %v1736_v40, %v1864_v17 }
 0x1a2   :  { %399 = vrot.lane.b32.xlu1 %v381_v43, %s1771_s1  ;;  %v328_v46 = vmul.f32 %v1738_v44, %v1857_v16 }
 0x1a3   :  { %v385_v36 = vmul.f32 %v329_v45, %v249_v57 }
 0x1a4   :  { %v384_v47 = vmul.f32 %v328_v46, %v248_v58 }
 0x1a5   :  { %407 = vrot.lane.b32.xlu0 %v385_v36, %s1771_s1 }
 0x1a6   :  { %405 = vrot.lane.b32.xlu1 %v384_v47, %s1771_s1 }
 0x1a8   :  { %v1740_v38 = vpop.eup %1739 }
 0x1a9   :  { %333 = vperm.xlu0 %1716, %v323_v8   ;;  %v330_v48 = vmul.f32 %v1740_v38, %v1869_v18 }
 0x1ab   :  { %v386_v49 = vmul.f32 %v330_v48, %v250_v23 }
 0x1ad   :  { %353 = vperm.xlu0 %1716, %v327_v32   ;;  %409 = vrot.lane.b32.xlu1 %v386_v49, %s1771_s1 }
 0x1b1   :  { %338 = vperm.xlu1 %1717, %v324_v59   ;;  %1718 = vset.pattern.permute.xlu0 %v1772_v20 }
 0x1b5   :  { %343 = vperm.xlu1 %1717, %v325_v14  }
 0x1b9   :  { %348 = vperm.xlu1 %1717, %v326_v34  }
 0x1bd   :  { %358 = vperm.xlu1 %1717, %v328_v46  }
 0x1c1   :  { %363 = vperm.xlu1 %1717, %v329_v45  }
 0x1c5   :  { %368 = vperm.xlu1 %1717, %v330_v48  }
 0x1c9   :  { %1719 = vset.pattern.permute.xlu1 %v1772_v20 }
 0x203   :  { %v398_v50 = vpop.permute.xlu0 %397 }
 0x204   :  { %v420_v51 = vsub.f32 %v1837_v12, %v398_v50 }
 0x206   :  { %434 = vperm.xlu0 %1718, %v420_v51  }
 0x207   :  { %v396_v54 = vpop.permute.xlu1 %395 }
 0x208   :  { %v419_v55 = vsub.f32 %v1823_v9, %v396_v54 }
 0x20a   :  { %429 = vperm.xlu1 %1719, %v419_v55  }
 0x20f   :  { %v404_v59 = vpop.permute.xlu0 %403 }
 0x210   :  { %v402_v57 = vpop.permute.xlu1 %401  ;;  %v423_v62 = vsub.f32 %v1852_v15, %v404_v59 }
 0x211   :  { %v422_v58 = vsub.f32 %v1842_v13, %v402_v57 }
 0x213   :  { %444 = vperm.xlu1 %1719, %v422_v58  }
 0x214   :  { %v400_v60 = vpop.permute.xlu1 %399 }
 0x215   :  { %v421_v12 = vsub.f32 %v1830_v10, %v400_v60  ;;  %v1776_v10 = vmov 56  }
 0x217   :  { %439 = vperm.xlu0 %1718, %v421_v12   ;;  %449 = vperm.xlu1 %1719, %v423_v62   ;;  %v408_v1 = vpop.permute.xlu0 %407  ;;  %v1777_v62 = vmov 57  }
 0x218   :  { %v406_v63 = vpop.permute.xlu1 %405  ;;  %v425_v2 = vsub.f32 %v1864_v17, %v408_v1 }
 0x219   :  { %v424_v0 = vsub.f32 %v1857_v16, %v406_v63 }
 0x21b   :  { %454 = vperm.xlu0 %1718, %v424_v0  }
 0x21f   :  { %459 = vperm.xlu0 %1718, %v425_v2   ;;  %v410_v3 = vpop.permute.xlu1 %409 }
 0x220   :  { %v426_v13 = vsub.f32 %v1869_v18, %v410_v3 }
 0x222   :  { %464 = vperm.xlu1 %1719, %v426_v13  }
 0x223   :  { %1720 = vset.pattern.permute.xlu0 %v1776_v10  ;;  %v1778_v10 = vmov 58  }
 0x224   :  { %484 = vperm.xlu0 %1720, %v1823_v9  }
 0x226   :  { %1722 = vset.pattern.permute.xlu1 %v1778_v10  ;;  %v1780_v10 = vmov 0  }
 0x228   :  { %v334_v7 = vpop.permute.xlu0 %333  ;;  %1721 = vset.pattern.permute.xlu0 %v1777_v62 }
 0x229   :  { %v371_v23 = vmul.f32 %v334_v7, %v1889_v24  ;;  %v31_v7 = vld [vmem:[%s2160_s2 + $0x8] sm:$0xff] }
 0x22c   :  { %v354_v18 = vpop.permute.xlu0 %353 }
 0x230   :  { %v339_v15 = vpop.permute.xlu1 %338 }
 0x231   :  { %v372_v21 = vmul.f32 %v339_v15, %v1887_v22  ;;  %v375_v22 = vmul.f32 %v354_v18, %v1909_v42 }
 0x234   :  { %v344_v16 = vpop.permute.xlu1 %343 }
 0x235   :  { %v373_v33 = vmul.f32 %v344_v16, %v1897_v31 }
 0x238   :  { %v349_v17 = vpop.permute.xlu1 %348 }
 0x239   :  { %v374_v32 = vmul.f32 %v349_v17, %v1907_v41 }
 0x23c   :  { %v359_v5 = vpop.permute.xlu1 %358 }
 0x23d   :  { %v376_v39 = vmul.f32 %v359_v5, %v1920_v52  ;;  %v30_v5 = vld [vmem:[%s2160_s2] sm:$0xff] }
 0x23e   :  { %v2010_v18 = vpack.c.bf16 %v31_v7, %v30_v5 }
 0x240   :  { %v364_v8 = vpop.permute.xlu1 %363 }
 0x241   :  { %v377_v41 = vmul.f32 %v364_v8, %v1922_v53  ;;  %v1993_v53 = vld [vmem:[%s2160_s2 + $0xa0] sm:$0xff]  ;;  %v35_v8 = vld [vmem:[%s2160_s2 + $0x28] sm:$0xff] }
 0x244   :  { %v369_v11 = vpop.permute.xlu1 %368 }
 0x245   :  { %v378_v42 = vmul.f32 %v369_v11, %v1934_v61  ;;  %v36_v11 = vld [vmem:[%s2160_s2 + $0x30] sm:$0xff] }
 0x285   :  { %v435_v19 = vpop.permute.xlu0 %434 }
 0x286   :  { %v468_v25 = vadd.f32 %v435_v19, %v372_v21  ;;  %v32_v19 = vld [vmem:[%s2160_s2 + $0x10] sm:$0xff]  ;;  %v33_v21 = vld [vmem:[%s2160_s2 + $0x18] sm:$0xff] }
 0x288   :  { %v476_v27 = vmax.f32 %v468_v25, 0.0  ;;  %v2025_v25 = vpack.c.bf16 %v33_v21, %v32_v19 }
 0x289   :  { %v430_v6 = vpop.permute.xlu1 %429 }
 0x28a   :  { %v467_v26 = vadd.f32 %v430_v6, %v371_v23  ;;  %v2022_v23 = vpack.c.bf16 %v36_v11, %v35_v8 }
 0x28c   :  { %v475_v28 = vmax.f32 %v467_v26, 0.0  ;;  %1661 = vmatpush3.bf16.msra.mxu0 %v2022_v23 }
 0x28d   :  { %1662 = vmatprep.subr.bf16.mxu0 %v1773_v56 }
 0x28e   :  { %v1642_v29 = vpack.c.bf16 %v476_v27, %v475_v28  ;;  %v37_v27 = vld [vmem:[%s2160_s2 + $0x38] sm:$0xff]  ;;  %v38_v28 = vld [vmem:[%s2160_s2 + $0x40] sm:$0xff] }
 0x290   :  { %1643 = vmatpush3.bf16.msra.mxu1 %v1642_v29  ;;  %v2039_v29 = vpack.c.bf16 %v38_v28, %v37_v27 }
 0x291   :  { %1644 = vmatprep.subr.bf16.mxu1 %v1773_v56 }
 0x292   :  { %v445_v30 = vpop.permute.xlu1 %444  ;;  %1664 = vmatpush3.bf16.msra.mxu0 %v2039_v29 }
 0x293   :  { %v470_v34 = vadd.f32 %v445_v30, %v374_v32  ;;  %v2045_v30 = vld [vmem:[%s2160_s2 + $0x20] sm:$0xf]  ;;  %1541 = vmatprep.subr.mxu0 %v1775_v4 }
 0x295   :  { %v478_v14 = vmax.f32 %v470_v34, 0.0  ;;  %v40_v34 = vld [vmem:[%s2160_s2 + $0x50] sm:$0xff] }
 0x296   :  { %v450_v35 = vpop.permute.xlu1 %449  ;;  %v440_v37 = vpop.permute.xlu0 %439 }
 0x297   :  { %v469_v24 = vadd.f32 %v440_v37, %v373_v33  ;;  %v471_v40 = vadd.f32 %v450_v35, %v375_v22  ;;  %v41_v35 = vld [vmem:[%s2160_s2 + $0x58] sm:$0xff] }
 0x299   :  { %v477_v43 = vmax.f32 %v469_v24, 0.0  ;;  %v479_v36 = vmax.f32 %v471_v40, 0.0  ;;  %v45_v24 = vld [vmem:[%s2160_s2 + $0x78] sm:$0xff] }
 0x29a   :  { %v455_v44 = vpop.permute.xlu0 %454 }
 0x29b   :  { %v1645_v45 = vpack.c.bf16 %v478_v14, %v477_v43  ;;  %v472_v46 = vadd.f32 %v455_v44, %v376_v39  ;;  %v46_v39 = vld [vmem:[%s2160_s2 + $0x80] sm:$0xff]  ;;  %v1666_v14 = vpack.c.bf16 %v41_v35, %v40_v34  ;;  %v43_v44 = vld [vmem:[%s2160_s2 + $0x68] sm:$0xff] }
 0x29c   :  { %v42_v43 = vld [vmem:[%s2160_s2 + $0x60] sm:$0xff] }
 0x29d   :  { %v480_v47 = vmax.f32 %v472_v46, 0.0  ;;  %1646 = vmatpush3.bf16.msra.mxu1 %v1645_v45  ;;  %v1672_v45 = vpack.c.bf16 %v46_v39, %v45_v24 }
 0x29e   :  { %v460_v31 = vpop.permute.xlu0 %459  ;;  %1647 = vmatprep.subr.bf16.mxu1 %v1773_v56 }
 0x29f   :  { %v1648_v38 = vpack.c.bf16 %v480_v47, %v479_v36  ;;  %v473_v48 = vadd.f32 %v460_v31, %v377_v41  ;;  %v47_v36 = vld [vmem:[%s2160_s2 + $0x88] sm:$0xff]  ;;  %v48_v47 = vld [vmem:[%s2160_s2 + $0x90] sm:$0xff]  ;;  %v1669_v41 = vpack.c.bf16 %v43_v44, %v42_v43 }
 0x2a0   :  { %v1675_v31 = vpack.c.bf16 %v48_v47, %v47_v36 }
 0x2a1   :  { %1649 = vmatpush3.bf16.msra.mxu1 %v1648_v38  ;;  %v465_v52 = vpop.permute.xlu1 %464  ;;  %v481_v20 = vmax.f32 %v473_v48, 0.0  ;;  %v49_v48 = vld [vmem:[%s2160_s2 + $0x98] sm:$0xf] }
 0x2a2   :  { %v474_v49 = vadd.f32 %v465_v52, %v378_v42  ;;  %1650 = vmatprep.subr.bf16.mxu1 %v1773_v56  ;;  %v44_v42 = vld [vmem:[%s2160_s2 + $0x70] sm:$0xf] }
 0x2a3   :  { %v485_v61 = vpop.permute.xlu0 %484 }
 0x2a4   :  { %v482_v50 = vmax.f32 %v474_v49, 0.0 }
 0x2a6   :  { %v1651_v51 = vpack.c.bf16 %v482_v50, %v481_v20 }
 0x2a8   :  { %1652 = vmatpush3.bf16.msra.mxu1 %v1651_v51 }
 0x2a9   :  { %1653 = vmatprep.subr.bf16.mxu1 %v1773_v56 }
 0x2ab   :  { %1518 = vmatmul.mubr.msk.f32.vlgmr.msra.gmra.mrb[0].mxu1 %vm487_vm4, %v1993_v53 }
 0x2ac   :  { %1530 = vmatprep.mubr.msk.f32.mxu1 %vm1774_vm3, %v1775_v4  ;;  %1655 = vmatpush3.bf16.msra.mxu1 %v2010_v18 }
 0x2ad   :  { %1656 = vmatprep.subr.bf16.mxu1 %v1773_v56 }
 0x2b0   :  { %1658 = vmatpush3.bf16.msra.mxu1 %v2025_v25 }
 0x2b1   :  { %1528 = vmatprep.subr.mxu1 %v1775_v4 }
 0x2b4   :  { %1529 = vmatpush3.msk.msra.mxu1 %vm599_vm6, %v2045_v30 }
 0x2b5   :  { %1665 = vmatprep.subr.bf16.mxu1 %v1773_v56 }
 0x37e   :  { %v557_v54 = vpop.f32.mrb[0].mxu1 }
 0x37f   :  { %v558_v55 = vadd.f32 %v557_v54, %v485_v61  ;;  %v1519_v57 = vpop.f32.mrb[1].mxu1 }
 0x381   :  { %v562_v58 = vsel %vm561_vm5, %v558_v55, 0.0  ;;  %v566_v59 = vmul.f32 %v558_v55, %v558_v55 }
 0x382   :  { %563 = vadd.xlane.f32.xlu1 %v562_v58 }
 0x383   :  { %v567_v60 = vsel %vm561_vm5, %v566_v59, 0.0 }
 0x384   :  { %568 = vadd.xlane.f32.xlu0 %v567_v60 }
 0x40f   :  { %v564_v12 = vpop.xlane.xlu1 %563 }
 0x410   :  { %v565_v63 = vmul.f32 0.013888889, %v564_v12 }
 0x411   :  { %v569_v0 = vpop.xlane.xlu0 %568 }
 0x412   :  { %v571_v1 = vmul.f32 %v565_v63, %v565_v63  ;;  %v570_v2 = vmul.f32 0.013888889, %v569_v0 }
 0x414   :  { %v572_v3 = vsub.f32 %v570_v2, %v571_v1 }
 0x416   :  { %v573_v13 = vadd.f32 1e-05, %v572_v3 }
 0x418   :  { %1741 = vrsqrt.f32 %v573_v13  ;;  %v51_v13 = vld [vmem:[%s2160_s2 + $0xa8] sm:$0xff] }
 0x422   :  { %v1742_v15 = vpop.eup %1741 }
 0x423   :  { %v575_v16 = vmul.f32 %v1742_v15, %v1823_v9 }
 0x425   :  { %578 = vperm.xlu0 %1721, %v575_v16   ;;  %v582_v17 = vmul.f32 %v575_v16, %v565_v63 }
 0x427   :  { %584 = vrot.lane.b32.xlu1 %v582_v17, %s1771_s1 }
 0x429   :  { %1724 = vset.pattern.permute.xlu0 %v1780_v10 }
 0x499   :  { %v585_v6 = vpop.permute.xlu1 %584 }
 0x49a   :  { %v587_v26 = vsub.f32 %v1823_v9, %v585_v6  ;;  %v39_v9 = vld [vmem:[%s2160_s2 + $0x48] sm:$0xf]  ;;  %s1781_s2 = smov [#allocation2]  }
 0x49b   :  { %1542 = vmatpush3.msk.msra.mxu0 %vm599_vm6, %v39_v9  ;;  %s1365_s30 = sshll.u32 %s1781_s2, 4  ;;  %s1366_s30 = int_to_ptr.vmem [resolvable:$true] %s1365_s30 }
 0x49c   :  { %590 = vperm.xlu1 %1722, %v587_v26   ;;  %1671 = vmatprep.subr.bf16.mxu0 %v1773_v56  ;;  %s1745_s4 = scalar_lea.vmem %s1366_s30, 16  ;;  %s1749_s5 = scalar_lea.vmem %s1366_s30, 32 }
 0x49d   :  { %p1746_p0 = scmp.ne.s32.totalorder %s1366_s30, %s1745_s4  ;;  %p1750_p1 = scmp.lt.s32.totalorder %s1366_s30, %s1366_s30 }
 0x49e   :  { %p1751_p2 = scmp.lt.s32.totalorder %s1749_s5, %s1745_s4 }
 0x4a0   :  { %1723 = vset.pattern.permute.xlu1 %v1780_v10  ;;  %p1752_p3 = por %p1751_p2, %p1750_p1 }
 0x4a2   :  { %p1753_p4 = pnand %p1752_p3, %p1746_p0 }
 0x4a4   :  { %v579_v32 = vpop.permute.xlu0 %578 }
 0x4a5   :  { %v581_v33 = vmul.f32 %v579_v32, %v558_v55 }
 0x51b   :  { %v591_v37 = vpop.permute.xlu1 %590 }
 0x51c   :  { %v593_v22 = vadd.f32 %v591_v37, %v581_v33 }
 0x51e   :  { %v594_v40 = vmax.f32 %v593_v22, 0.0 }
 0x520   :  { %v677_v46 = vrot.slane %v594_v40, 1  ;;  %917 = vrot.lane.b32.xlu1 %v594_v40, %s1779_s19  ;;  %1531 = vmatmul.mubr.msk.f32.vlgmr.msra.gmra.mrb[2].mxu1 %vm595_vm7, %v594_v40  ;;  %v757_v38 = vrot.slane %v594_v40, 2  ;;  %v837_v52 = vrot.slane %v594_v40, 3 }
 0x521   :  { %1667 = vmatpush3.bf16.msra.mxu1 %v1666_v14  ;;  %1556 = vmatprep.mubr.msk.f32.mxu1 %vm1774_vm3, %v1775_v4 }
 0x522   :  { %1544 = vmatmul.mubr.msk.f32.vlgmr.msra.gmra.mrb[8].mxu0 %vm595_vm7, %v677_v46  ;;  %1668 = vmatprep.subr.bf16.mxu1 %v1773_v56 }
 0x523   :  { %1673 = vmatpush3.bf16.msra.mxu0 %v1672_v45  ;;  %1569 = vmatprep.mubr.msk.f32.mxu0 %vm1774_vm3, %v1775_v4 }
 0x524   :  { %995 = vrot.lane.b32.xlu1 %v677_v46, %s1779_s19  ;;  %1674 = vmatprep.subr.bf16.mxu0 %v1773_v56 }
 0x525   :  { %1670 = vmatpush3.bf16.msra.mxu1 %v1669_v41 }
 0x526   :  { %1554 = vmatprep.subr.mxu1 %v1775_v4 }
 0x527   :  { %1676 = vmatpush3.bf16.msra.mxu0 %v1675_v31 }
 0x528   :  { %1073 = vrot.lane.b32.xlu1 %v757_v38, %s1779_s19  ;;  %1567 = vmatprep.subr.mxu0 %v1775_v4 }
 0x529   :  { %1555 = vmatpush3.msk.msra.mxu1 %vm599_vm6, %v44_v42 }
 0x52a   :  { %1557 = vmatmul.mubr.msk.f32.vlgmr.msra.gmra.mrb[4].mxu1 %vm595_vm7, %v757_v38  ;;  %1677 = vmatprep.subr.bf16.mxu1 %v1773_v56 }
 0x52b   :  { %1568 = vmatpush3.msk.msra.mxu0 %vm599_vm6, %v49_v48  ;;  %1679 = vmatpush3.bf16.msra.mxu1 %v2010_v18 }
 0x52c   :  { %1570 = vmatmul.mubr.msk.f32.vlgmr.msra.gmra.mrb[10].mxu0 %vm595_vm7, %v837_v52  ;;  %1151 = vrot.lane.b32.xlu1 %v837_v52, %s1779_s19 }
 0x52d   :  { %1680 = vmatprep.subr.bf16.mxu1 %v1773_v56  ;;  %1683 = vmatprep.subr.bf16.mxu0 %v1773_v56 }
 0x52e   :  { %1685 = vmatpush3.bf16.msra.mxu0 %v2022_v23  ;;  %1582 = vmatprep.mubr.msk.f32.mxu1 %vm1774_vm3, %v1775_v4 }
 0x52f   :  { %1682 = vmatpush3.bf16.msra.mxu1 %v2025_v25  ;;  %1686 = vmatprep.subr.bf16.mxu0 %v1773_v56 }
 0x530   :  { %1580 = vmatprep.subr.mxu1 %v1775_v4  ;;  %1595 = vmatprep.mubr.msk.f32.mxu0 %vm1774_vm3, %v1775_v4 }
 0x531   :  { %1278 = vperm.xlu1 %1723, %v51_v13  }
 0x532   :  { %1688 = vmatpush3.bf16.msra.mxu0 %v2039_v29 }
 0x533   :  { %1581 = vmatpush3.msk.msra.mxu1 %vm599_vm6, %v2045_v30  ;;  %1593 = vmatprep.subr.mxu0 %v1775_v4 }
 0x534   :  { %1689 = vmatprep.subr.bf16.mxu1 %v1773_v56 }
 0x536   :  { %1594 = vmatpush3.msk.msra.mxu0 %vm599_vm6, %v39_v9 }
 0x537   :  { %1695 = vmatprep.subr.bf16.mxu0 %v1773_v56 }
 0x592   :  { %v918_v49 = vpop.permute.xlu1 %917 }
 0x593   :  { %1583 = vmatmul.mubr.msk.f32.vlgmr.msra.gmra.mrb[6].mxu1 %vm595_vm7, %v918_v49 }
 0x594   :  { %1691 = vmatpush3.bf16.msra.mxu1 %v1666_v14  ;;  %1608 = vmatprep.mubr.msk.f32.mxu1 %vm1774_vm3, %v1775_v4 }
 0x595   :  { %1692 = vmatprep.subr.bf16.mxu1 %v1773_v56 }
 0x596   :  { %v996_v20 = vpop.permute.xlu1 %995 }
 0x597   :  { %1596 = vmatmul.mubr.msk.f32.vlgmr.msra.gmra.mrb[12].mxu0 %vm595_vm7, %v996_v20 }
 0x598   :  { %1694 = vmatpush3.bf16.msra.mxu1 %v1669_v41  ;;  %1697 = vmatpush3.bf16.msra.mxu0 %v1672_v45 }
 0x599   :  { %1606 = vmatprep.subr.mxu1 %v1775_v4  ;;  %1698 = vmatprep.subr.bf16.mxu0 %v1773_v56 }
 0x59a   :  { %v1074_v50 = vpop.permute.xlu1 %1073  ;;  %1621 = vmatprep.mubr.msk.f32.mxu0 %vm1774_vm3, %v1775_v4 }
 0x59c   :  { %1607 = vmatpush3.msk.msra.mxu1 %vm599_vm6, %v44_v42  ;;  %1700 = vmatpush3.bf16.msra.mxu0 %v1675_v31 }
 0x59d   :  { %1609 = vmatmul.mubr.msk.f32.vlgmr.msra.gmra.mrb[8].mxu1 %vm595_vm7, %v1074_v50  ;;  %1619 = vmatprep.subr.mxu0 %v1775_v4 }
 0x59e   :  { %v1152_v51 = vpop.permute.xlu1 %1151  ;;  %1624 = vmatprep.subr.mxu1 %v1775_v4  ;;  %1626 = vmatprep.mubr.msk.f32.mxu1 %vm1774_vm3, %v1775_v4 }
 0x5a0   :  { %1620 = vmatpush3.msk.msra.mxu0 %vm599_vm6, %v49_v48  ;;  %v1260_v48 = vlaneseq }
 0x5a1   :  { %1622 = vmatmul.mubr.msk.f32.vlgmr.msra.gmra.mrb[14].mxu0 %vm595_vm7, %v1152_v51 }
 0x5a2   :  { %v1261_v52 = vshrl.u32 %v1260_v48, 7 }
 0x5a4   :  { %v1262_v50 = vsub.s32 6, %v1261_v52 }
 0x5f3   :  { %v669_v56 = vpop.f32.mrb[2].mxu1 }
 0x5f4   :  { %v674_v61 = vrot.slane %v669_v56, 3  ;;  %v1532_v54 = vpop.f32.mrb[3].mxu1 }
 0x5f5   :  { %v749_v55 = vpop.f32.mrb[8].mxu0  ;;  %v1272_v54 = vsub.s32 7, %v1261_v52 }
 0x5f6   :  { %v676_v57 = vadd.f32 %v674_v61, %v1993_v53  ;;  %v754_v58 = vrot.slane %v749_v55, 3  ;;  %v1545_v59 = vpop.f32.mrb[9].mxu0 }
 0x5f8   :  { %v756_v60 = vadd.f32 %v754_v58, %v676_v57 }
 0x5fd   :  { %v829_v62 = vpop.f32.mrb[4].mxu1 }
 0x5fe   :  { %v834_v12 = vrot.slane %v829_v62, 3  ;;  %v1558_v63 = vpop.f32.mrb[5].mxu1  ;;  %v1281_v62 = vrot.slane %v1993_v53, 4 }
 0x5ff   :  { %v909_v0 = vpop.f32.mrb[10].mxu0 }
 0x600   :  { %v836_v1 = vadd.f32 %v834_v12, %v756_v60  ;;  %v914_v2 = vrot.slane %v909_v0, 3  ;;  %v1571_v4 = vpop.f32.mrb[11].mxu0  ;;  %v1279_v12 = vpop.permute.xlu1 %1278 }
 0x602   :  { %v916_v3 = vadd.f32 %v914_v2, %v836_v1 }
 0x604   :  { %v1230_v29 = vrot.slane %v916_v3, 5 }
 0x666   :  { %v987_v15 = vpop.f32.mrb[6].mxu1 }
 0x667   :  { %v992_v16 = vrot.slane %v987_v15, 3  ;;  %v1584_v17 = vpop.f32.mrb[7].mxu1 }
 0x669   :  { %v994_v7 = vadd.f32 %v992_v16, %v1993_v53 }
 0x66a   :  { %v1065_v5 = vpop.f32.mrb[12].mxu0 }
 0x66b   :  { %v1070_v8 = vrot.slane %v1065_v5, 3  ;;  %v1597_v18 = vpop.f32.mrb[13].mxu0 }
 0x66d   :  { %v1072_v11 = vadd.f32 %v1070_v8, %v994_v7 }
 0x670   :  { %v1143_v19 = vpop.f32.mrb[8].mxu1 }
 0x671   :  { %v1148_v21 = vrot.slane %v1143_v19, 3  ;;  %v1610_v23 = vpop.f32.mrb[9].mxu1 }
 0x673   :  { %v1150_v25 = vadd.f32 %v1148_v21, %v1072_v11 }
 0x674   :  { %v1221_v6 = vpop.f32.mrb[14].mxu0 }
 0x675   :  { %v1226_v26 = vrot.slane %v1221_v6, 3  ;;  %v1623_v27 = vpop.f32.mrb[15].mxu0 }
 0x677   :  { %v1228_v28 = vadd.f32 %v1226_v26, %v1150_v25 }
 0x679   :  { %v1233_v30 = vrot.slane %v1228_v28, 4 }
 0x67b   :  { %v1236_v9 = vsel %vm1235_vm8, %v1230_v29, %v1233_v30 }
 0x67c   :  { %v1238_v32 = vsel %vm1237_vm9, %v1236_v9, 0.0  ;;  %v1246_v33 = vmul.f32 %v1236_v9, %v1236_v9 }
 0x67d   :  { %v1239_v34 = vrot.slane %v1238_v32, 4 }
 0x67e   :  { %v1247_v35 = vsel %vm1237_vm9, %v1246_v33, 0.0 }
 0x67f   :  { %v1240_v37 = vadd.f32 %v1239_v34, %v1238_v32  ;;  %v1248_v22 = vrot.slane %v1247_v35, 4 }
 0x681   :  { %v1241_v24 = vrot.slane %v1240_v37, 2  ;;  %v1249_v39 = vadd.f32 %v1248_v22, %v1247_v35 }
 0x683   :  { %v1242_v14 = vadd.f32 %v1241_v24, %v1240_v37  ;;  %v1250_v40 = vrot.slane %v1249_v39, 2 }
 0x685   :  { %v1243_v43 = vrot.slane %v1242_v14, 1  ;;  %v1251_v44 = vadd.f32 %v1250_v40, %v1249_v39 }
 0x687   :  { %v1244_v45 = vadd.f32 %v1243_v43, %v1242_v14  ;;  %v1252_v46 = vrot.slane %v1251_v44, 1 }
 0x689   :  { %v1245_v36 = vmul.f32 0.5, %v1244_v45  ;;  %v1253_v47 = vadd.f32 %v1252_v46, %v1251_v44 }
 0x68b   :  { %v1254_v41 = vmul.f32 0.5, %v1253_v47  ;;  %v1255_v31 = vmul.f32 %v1245_v36, %v1245_v36 }
 0x68d   :  { %v1256_v38 = vsub.f32 %v1254_v41, %v1255_v31 }
 0x68f   :  { %v1257_v42 = vadd.f32 1e-05, %v1256_v38 }
 0x691   :  { %1743 = vrsqrt.f32 %v1257_v42 }
 0x69b   :  { %v1744_v49 = vpop.eup %1743 }
 0x69c   :  { %v1259_v20 = vmul.f32 %v1744_v49, %v1993_v53 }
 0x69e   :  { %v1265_v51 = vmul.f32 %v1259_v20, %v1245_v36  ;;  %v1263_v56 = vrot.slane %v1259_v20, %v1262_v50 }
 0x6a0   :  { %v1267_v61 = vrot.slane %v1265_v51, 7  ;;  %v1264_v57 = vmul.f32 %v1263_v56, %v1236_v9 }
 0x6a2   :  { %v1269_v55 = vsub.f32 %v1993_v53, %v1267_v61 }
 0x6a4   :  { %v1273_v58 = vrot.slane %v1269_v55, %v1272_v54 }
 0x6a6   :  { %v1274_v59 = vadd.f32 %v1273_v58, %v1264_v57 }
 0x6a8   :  { %v1275_v60 = vmax.f32 %v1274_v59, 0.0 }
 0x6aa   :  { %1625 = vmatpush3.xpose.msk.msra.mxu1 %vm487_vm4, %v1275_v60 }
 0x6ad   :  { %1627 = vmatmul.mubr.msk.f32.vlgmr.msra.gmra.mrb[10].mxu1 %vm487_vm4, %v1281_v62 }
 0x780   :  { %v1353_v63 = vpop.f32.mrb[10].mxu1 }
 0x781   :  { %v1354_v0 = vadd.f32 %v1353_v63, %v1279_v12  ;;  %v1628_v1 = vpop.f32.mrb[11].mxu1 }
 0x783   :  { %1358 = vst.msk [vmem:[#allocation2] sm:$0x1] %vm1357_vm10, %v1354_v0 }
 0x784   :  { %1756 = shalt.err (!%p1753_p4)
}
 0x785   :  { %s1757_s8 = scalar_lea.hbm %s2161_s3, 16 }
 0x786   :  { %p1758_p5 = scmp.ne.s32.totalorder %s2161_s3, %s1757_s8  ;;  %p1761_p6 = scmp.lt.u32.totalorder %s1757_s8, %s2161_s3 }
 0x788   :  { %p1763_p7 = pnand %p1761_p6, %p1758_p5 }
 0x78a   :  { %1766 = shalt.err (!%p1763_p7)
}
 0x78b   :  { %1368 = dma.vmem_to_hbm [thread:$0]  %s1366_s30, 16, %s2161_s3, [#allocation3]  }
 0x78c   :  { %1767 = dma.done.wait [#allocation3], 16  }
 0x78d   :  { %1768 = vsyncadd [#allocation3], 4294967280 }
 0x78e   :  { %1372 = vsyncpa [#allocation3], 1 }

</bundles_post_ra>
